<compile_context>
chip_gen: v6e
topology: v6e:2x2x1
jax: 0.10.0
libtpu: 0.0.40
codegen_flags: <defaults>
</compile_context>

<pallas_src>
import functools
import itertools

import numpy as np
import jax
import jax.numpy as jnp
from jax import lax
from jax.experimental import pallas as pl
from jax.experimental.pallas import tpu as pltpu

try:  # exact Hungarian solver if available
    from scipy.optimize import linear_sum_assignment as _lsa
except Exception:  # pragma: no cover
    _lsa = None

ALPHA = 0.25            # focal-loss alpha (MaskFormer default)
GAMMA = 2.0             # focal-loss gamma (== 2 -> explicit squares below)
T_PAD = 128             # lane-padded max number of GT classes per image
PRED_PAD_VALUE = -30.0  # padded pred logits -> sigmoid ~ 1e-13, contributes ~0
LABEL_PAD_VALUE = -2    # never equals a real class id or padded class id (-1)


# ----------------------------------------------------------------------------
# Chip-aware sizing helpers
# ----------------------------------------------------------------------------
def _physical_vmem_bytes():
    try:
        return int(pltpu.get_tpu_info().vmem_capacity_bytes)
    except Exception:  # pragma: no cover - conservative fallback
        return 64 * 1024 * 1024


def _vmem_budget():
    """(per-kernel working-set budget, compiler vmem limit) per generation."""
    phys = _physical_vmem_bytes()
    if phys >= 100 * (1 << 20):          # v5e / v6e: 128 MiB physical VMEM
        return 56 * (1 << 20), 100 * (1 << 20)
    return 28 * (1 << 20), 48 * (1 << 20)   # v7x: 64 MiB physical VMEM


def _round_up(x, m):
    return ((x + m - 1) // m) * m


def _cost_tile(n, q_blk, budget, override=None):
    """Pixel-tile (lane) width for the matching-cost kernel."""
    if override is not None:
        tn = max(128, (int(override) // 128) * 128)
    else:
        # bytes per lane column: double-buffered pred + label tiles, the bf16
        # one-hot target tile and ~8 live (q_blk, tn) f32 elementwise temps.
        per_lane = q_blk * 4 * (2 + 8) + T_PAD * 3 + 16
        tn = max(128, (budget // per_lane // 128) * 128)
        tn = min(tn, 16384)
    tn = min(tn, _round_up(n, 128))
    return max(128, tn)


def _loss_tile(n_pad, tn_cost, m_rows, budget, override=None):
    """Pixel-tile width for the matched-pair loss kernel (multiple of tn_cost)."""
    n_tiles = n_pad // tn_cost
    if override is not None:
        cap = max(tn_cost, (int(override) // 128) * 128)
    else:
        per_lane = m_rows * 44 + 16
        cap = max(tn_cost, min(65536, (budget // per_lane // 128) * 128))
    m = max(1, min(cap // tn_cost, n_tiles))
    while n_tiles % m != 0:
        m -= 1
    return tn_cost * m


# ----------------------------------------------------------------------------
# Pallas kernel 1: matching cost matrices, grid (image, q-block, pixel-tile)
# ----------------------------------------------------------------------------
def _cost_kernel(mask_ref, lab_ref, cls_ref, tsum_ref, cmask_ref, cdice_ref,
                 acc_cmask, acc_num, acc_fneg, acc_prob, *, inv_n):
    n_idx = pl.program_id(2)

    @pl.when(n_idx == 0)
    def _init():
        acc_cmask[...] = jnp.zeros_like(acc_cmask)
        acc_num[...] = jnp.zeros_like(acc_num)
        acc_fneg[...] = jnp.zeros_like(acc_fneg)
        acc_prob[...] = jnp.zeros_like(acc_prob)

    x = mask_ref[0]                 # (q_blk, tn)  predicted mask logits
    lab = lab_ref[0]                # (1, tn)      int32 label-map tile
    cls = cls_ref[0]                # (T_PAD, 1)   int32 per-image class ids

    # One-hot GT tile rebuilt on the VPU (no HBM target tensor at all).
    t_bf = jnp.where(lab == cls, 1.0, 0.0).astype(jnp.bfloat16)   # (T_PAD, tn)

    # Shared-exp sigmoid / softplus: a single EUP exp per pred element.
    e = jnp.exp(-jnp.abs(x))
    log1pe = jnp.log1p(e)
    sp_pos = jnp.maximum(-x, 0.0) + log1pe                  # BCE(x, 1) = softplus(-x)
    sp_neg = sp_pos + x                                     # BCE(x, 0) = softplus(x)
    prob = jnp.where(x >= 0.0, 1.0, e) * pl.reciprocal(1.0 + e, approx=True)
    omp = 1.0 - prob
    focal_pos = ALPHA * (omp * omp) * sp_pos                # gamma=2 -> square
    focal_neg = (1.0 - ALPHA) * (prob * prob) * sp_neg

    # cmask = [rowsum(focal_neg) + (focal_pos - focal_neg) @ t^T] / N
    dn = (((1,), (1,)), ((), ()))                           # contract pixel axis
    acc_cmask[...] += lax.dot_general(
        (focal_pos - focal_neg).astype(jnp.bfloat16), t_bf, dn,
        preferred_element_type=jnp.float32)
    acc_num[...] += lax.dot_general(
        prob.astype(jnp.bfloat16), t_bf, dn,
        preferred_element_type=jnp.float32)
    acc_fneg[...] += jnp.sum(focal_neg, axis=-1, keepdims=True)
    acc_prob[...] += jnp.sum(prob, axis=-1, keepdims=True)

    @pl.when(n_idx == pl.num_programs(2) - 1)
    def _finalize():
        cmask_ref[0] = (acc_fneg[...] + acc_cmask[...]) * inv_n
        den = acc_prob[...] + tsum_ref[0]                   # (q_blk,1) + (1,T)
        cdice_ref[0] = 1.0 - (2.0 * acc_num[...] + 1.0) / (den + 1.0)


def _matching_costs(pred, label3, cls3, tsum3, *, tn, q_split, n_true,
                    vmem_limit):
    B, Q, n_pad = pred.shape
    q_blk = Q // q_split
    kernel = functools.partial(_cost_kernel, inv_n=1.0 / float(n_true))
    return pl.pallas_call(
        kernel,
        out_shape=(jax.ShapeDtypeStruct((B, Q, T_PAD), jnp.float32),
                   jax.ShapeDtypeStruct((B, Q, T_PAD), jnp.float32)),
        grid=(B, q_split, n_pad // tn),
        in_specs=[pl.BlockSpec((1, q_blk, tn), lambda b, qs, n: (b, qs, n)),
                  pl.BlockSpec((1, 1, tn), lambda b, qs, n: (b, 0, n)),
                  pl.BlockSpec((1, T_PAD, 1), lambda b, qs, n: (b, 0, 0)),
                  pl.BlockSpec((1, 1, T_PAD), lambda b, qs, n: (b, 0, 0))],
        out_specs=(pl.BlockSpec((1, q_blk, T_PAD), lambda b, qs, n: (b, qs, 0)),
                   pl.BlockSpec((1, q_blk, T_PAD), lambda b, qs, n: (b, qs, 0))),
        scratch_shapes=[pltpu.VMEM((q_blk, T_PAD), jnp.float32),
                        pltpu.VMEM((q_blk, T_PAD), jnp.float32),
                        pltpu.VMEM((q_blk, 1), jnp.float32),
                        pltpu.VMEM((q_blk, 1), jnp.float32)],
        compiler_params=pltpu.CompilerParams(
            dimension_semantics=("parallel", "parallel", "arbitrary"),
            vmem_limit_bytes=vmem_limit),
    )(pred, label3, cls3, tsum3)


# ----------------------------------------------------------------------------
# Pallas kernel 2: matched-pair focal/dice partial sums, grid (half, pixel-tile)
# ----------------------------------------------------------------------------
def _loss_kernel(src_ref, lab_ref, cls_ref, focal_ref, num_ref, den_ref,
                 acc_focal, acc_num, acc_den):
    n_idx = pl.program_id(1)

    @pl.when(n_idx == 0)
    def _init():
        acc_focal[...] = jnp.zeros_like(acc_focal)
        acc_num[...] = jnp.zeros_like(acc_num)
        acc_den[...] = jnp.zeros_like(acc_den)

    x = src_ref[...]                                          # (M, tn) logits
    t = jnp.where(lab_ref[...] == cls_ref[...], 1.0, 0.0)     # (M, tn) one-hot GT

    e = jnp.exp(-jnp.abs(x))
    log1pe = jnp.log1p(e)
    prob = jnp.where(x >= 0.0, 1.0, e) * pl.reciprocal(1.0 + e, approx=True)
    ce = jnp.maximum(x, 0.0) - x * t + log1pe                 # stable BCE(x, t)
    p_t = prob * t + (1.0 - prob) * (1.0 - t)
    alpha_t = ALPHA * t + (1.0 - ALPHA) * (1.0 - t)
    q = 1.0 - p_t
    acc_focal[...] += jnp.sum(alpha_t * ce * (q * q), axis=-1, keepdims=True)
    acc_num[...] += jnp.sum(prob * t, axis=-1, keepdims=True)
    acc_den[...] += jnp.sum(prob + t, axis=-1, keepdims=True)

    @pl.when(n_idx == pl.num_programs(1) - 1)
    def _finalize():
        focal_ref[0] = acc_focal[...]
        num_ref[0] = acc_num[...]
        den_ref[0] = acc_den[...]


def _mask_loss_partials(src, lab_rows, cls_m, *, tn, halves, vmem_limit):
    M, n_pad = src.shape
    per_half = (n_pad // tn) // halves
    return pl.pallas_call(
        _loss_kernel,
        out_shape=(jax.ShapeDtypeStruct((halves, M, 1), jnp.float32),) * 3,
        grid=(halves, per_half),
        in_specs=[pl.BlockSpec((M, tn), lambda h, n: (0, h * per_half + n)),
                  pl.BlockSpec((M, tn), lambda h, n: (0, h * per_half + n)),
                  pl.BlockSpec((M, 1), lambda h, n: (0, 0))],
        out_specs=(pl.BlockSpec((1, M, 1), lambda h, n: (h, 0, 0)),) * 3,
        scratch_shapes=[pltpu.VMEM((M, 1), jnp.float32)] * 3,
        compiler_params=pltpu.CompilerParams(
            dimension_semantics=("parallel", "arbitrary"),
            vmem_limit_bytes=vmem_limit),
    )(src, lab_rows, cls_m)


# ----------------------------------------------------------------------------
# Host glue: prepare_targets + Hungarian matching + weighting
# ----------------------------------------------------------------------------
def _assignment(cost):
    # Exact optimal bipartite assignment (scipy when available).
    # TODO(synk): Hungarian matching is sequential/combinatorial; it runs on
    # the host rather than inside a Pallas kernel.
    if _lsa is not None:
        r, c = _lsa(cost)
        return np.asarray(r, np.int64), np.asarray(c, np.int64)
    Qn, Tn = cost.shape
    if Tn > Qn:
        rT, cT = _assignment(cost.T)
        return cT, rT
    best_perm, best_cost = None, np.inf
    cols = np.arange(Tn, dtype=np.int64)
    for perm in itertools.permutations(range(Qn), Tn):   # tiny problems only
        c = cost[list(perm), cols].sum()
        if c < best_cost:
            best_cost, best_perm = c, perm
    return np.asarray(best_perm, dtype=np.int64), cols


def mask_loss_forward(outputs, label, *, num_classes, mask_weight=20.0,
                      dice_weight=1.0, cls_weight=1.0, loss_weight=1.0,
                      ignore_index=255, tile_lanes=None, loss_tile_lanes=None):
    del num_classes  # kept for signature parity with the reference module
    pred_logits = outputs["pred_logits"]          # [B, Q, num_classes + 1]
    pred_masks = outputs["pred_masks"]            # [B, Q, H, W]
    B, Q, H, W = pred_masks.shape
    N = H * W
    # NOTE: pred and GT masks share the same spatial size here, so both resize
    # steps of the reference (nearest down-sample in the matcher, bilinear
    # up-sample in the loss) are identities.
    # TODO(synk): implement bilinear/nearest resampling when pred/GT sizes differ.

    budget, vmem_limit = _vmem_budget()

    # ---- prepare_targets: per-image class ids + pixel counts (host numpy) ---
    label_np = np.asarray(jax.device_get(label)).reshape(B, N).astype(np.int64)
    labels_pad = np.full((B, T_PAD), -1, np.int32)   # -1 never matches a pixel
    tsum_np = np.zeros((B, 1, T_PAD), np.float32)
    counts, cls_lists = [], []
    for b in range(B):
        vals, cnts = np.unique(label_np[b], return_counts=True)
        keep = vals != ignore_index
        vals, cnts = vals[keep], cnts[keep]
        t_i = min(int(vals.size), T_PAD)      # T_PAD=128 covers real label sets
        counts.append(t_i)
        cls_lists.append(vals[:t_i].astype(np.int32))
        if t_i == 0:
            # Reference builds an ignore-mask target; nothing is matched to it.
            continue
        labels_pad[b, :t_i] = vals[:t_i]
        tsum_np[b, 0, :t_i] = cnts[:t_i].astype(np.float32)

    # ---- pixel padding + chip-aware tile selection ---------------------------
    q_split = 2 if (B == 1 and Q % 2 == 0 and (Q // 2) % 8 == 0) else 1
    q_blk = Q // q_split
    tn = _cost_tile(N, q_blk, budget, tile_lanes)
    n_pad = _round_up(N, tn)

    pred_flat = pred_masks.reshape(B, Q, N).astype(jnp.float32)
    label_dev = jnp.reshape(label, (B, 1, N)).astype(jnp.int32)
    if n_pad != N:
        pred_flat = jnp.pad(pred_flat, ((0, 0), (0, 0), (0, n_pad - N)),
                            constant_values=PRED_PAD_VALUE)
        label_dev = jnp.pad(label_dev, ((0, 0), (0, 0), (0, n_pad - N)),
                            constant_values=LABEL_PAD_VALUE)
    cls_dev = jnp.asarray(labels_pad).reshape(B, T_PAD, 1)
    tsum_dev = jnp.asarray(tsum_np)

    # ---- matching cost matrices (Pallas, tiled over pixels) ------------------
    cost_mask, cost_dice = _matching_costs(
        pred_flat, label_dev, cls_dev, tsum_dev,
        tn=tn, q_split=q_split, n_true=N, vmem_limit=vmem_limit)

    # Full weighted cost assembled on device -> single host sync.
    out_prob = jax.nn.softmax(pred_logits.astype(jnp.float32), axis=-1)
    gather_idx = jnp.asarray(np.maximum(labels_pad, 0))[:, None, :]
    cost_class = -jnp.take_along_axis(out_prob, gather_idx, axis=-1)  # (B,Q,T)
    cost_total = (mask_weight * cost_mask + cls_weight * cost_class
                  + dice_weight * cost_dice)
    cost_total = np.asarray(jax.device_get(cost_total))

    # ---- Hungarian matching (host) + matched-pair gather indices -------------
    pairs, total = [], 0
    for b in range(B):
        t_i = counts[b]
        if t_i == 0:
            continue
        rows, cols = _assignment(cost_total[b, :, :t_i])
        for qi, ji in zip(rows, cols):
            pairs.append((b, int(qi), int(cls_lists[b][ji])))
        total += t_i
    num_masks = float(max(total, 1))

    m_pad = max(8, _round_up(max(total, 1), 8))     # sublane multiple
    b_idx = np.zeros((m_pad,), np.int32)
    q_idx = np.zeros((m_pad,), np.int32)
    cls_m = np.full((m_pad, 1), -1, np.int32)       # -1 -> all-zero GT row
    valid = np.zeros((m_pad, 1), np.float32)
    for r, (b, qi, ci) in enumerate(pairs):
        b_idx[r], q_idx[r], cls_m[r, 0] = b, qi, ci
        valid[r, 0] = 1.0

    # Matched pred/label rows gathered on device; GT rows are rebuilt in-kernel.
    # TODO(synk): fuse this row gather into the loss kernel via scalar-prefetch
    # driven manual DMA to avoid the (M, N) staging arrays entirely.
    src = pred_flat[jnp.asarray(b_idx), jnp.asarray(q_idx)]        # (M, n_pad)
    lab_rows = label_dev[jnp.asarray(b_idx), 0]                    # (M, n_pad)

    # ---- matched-pair focal + dice partials (Pallas, tiled over pixels) ------
    tn_loss = _loss_tile(n_pad, tn, m_pad, budget, loss_tile_lanes)
    n_tiles_loss = n_pad // tn_loss
    halves = 2 if n_tiles_loss % 2 == 0 else 1
    focal_p, num_p, den_p = _mask_loss_partials(
        src, lab_rows, jnp.asarray(cls_m),
        tn=tn_loss, halves=halves, vmem_limit=vmem_limit)

    # Combine per-half partials, finalize dice, apply validity mask (XLA, tiny).
    valid_dev = jnp.asarray(valid)
    focal_rows = jnp.sum(focal_p, axis=0)                      # (M, 1)
    num_rows = jnp.sum(num_p, axis=0)
    den_rows = jnp.sum(den_p, axis=0)
    dice_rows = 1.0 - (2.0 * num_rows + 1.0) / (den_rows + 1.0)
    focal_sum = jnp.sum(focal_rows * valid_dev) * (1.0 / float(N))
    dice_sum = jnp.sum(dice_rows * valid_dev)

    loss_mask = (focal_sum / num_masks) * mask_weight * loss_weight
    loss_dice = (dice_sum / num_masks) * dice_weight * loss_weight
    # 'loss_ce' is in weight_dict but losses=['masks'] never produces it.
    return {"loss_mask": loss_mask, "loss_dice": loss_dice}


# ----------------------------------------------------------------------------
if __name__ == "__main__":
    key = jax.random.PRNGKey(0)
    k1, k2, k3 = jax.random.split(key, 3)

    # Config 1: B=2 (batch-parallel cost grid), forced tiny tiles so the tiled
    # accumulator path and the two-half loss grid are exercised.
    B, Q, H, W = 2, 8, 16, 16
    num_classes = 4
    pred_logits = jax.random.normal(k1, (B, Q, num_classes + 1), jnp.float32)
    pred_masks = jax.random.normal(k2, (B, Q, H, W), jnp.float32)
    label = jax.random.randint(k3, (B, H, W), 0, num_classes).astype(jnp.int32)
    label = label.at[:, :2, :].set(255)   # some ignore_index pixels

    outputs = {"pred_logits": pred_logits, "pred_masks": pred_masks}
    losses = mask_loss_forward(outputs, label, num_classes=num_classes,
                               tile_lanes=128, loss_tile_lanes=128)
    jax.block_until_ready(losses["loss_mask"])
    jax.block_until_ready(losses["loss_dice"])

    # Config 2: B=1 exercises the parallel Q-split path, odd N exercises
    # on-device pixel padding, tiles auto-sized from chip VMEM.
    k4, k5, k6 = jax.random.split(jax.random.PRNGKey(1), 3)
    B2, Q2, H2, W2 = 1, 16, 16, 25
    pred_logits2 = jax.random.normal(k4, (B2, Q2, 4), jnp.float32)
    pred_masks2 = jax.random.normal(k5, (B2, Q2, H2, W2), jnp.float32)
    label2 = jax.random.randint(k6, (B2, H2, W2), 0, 3).astype(jnp.int32)
    outputs2 = {"pred_logits": pred_logits2, "pred_masks": pred_masks2}
    losses2 = mask_loss_forward(outputs2, label2, num_classes=3)
    jax.block_until_ready(losses2["loss_mask"])
    jax.block_until_ready(losses2["loss_dice"])

    print("KERNEL_OK")
</pallas_src>

<mosaic_0001>
module attributes {stable_mosaic.version = 11 : i64} {
  func.func @_cost_kernel(%arg0: i32, %arg1: i32, %arg2: i32, %arg3: memref<1x8x128xf32, #tpu.memory_space<vmem>>, %arg4: memref<1x1x128xi32, #tpu.memory_space<vmem>>, %arg5: memref<1x128x1xi32, #tpu.memory_space<vmem>>, %arg6: memref<1x1x128xf32, #tpu.memory_space<vmem>>, %arg7: memref<1x8x128xf32, #tpu.memory_space<vmem>>, %arg8: memref<1x8x128xf32, #tpu.memory_space<vmem>>, %arg9: memref<8x128xf32, #tpu.memory_space<vmem>>, %arg10: memref<8x128xf32, #tpu.memory_space<vmem>>, %arg11: memref<8x1xf32, #tpu.memory_space<vmem>>, %arg12: memref<8x1xf32, #tpu.memory_space<vmem>>) attributes {dimension_semantics = [#tpu.dimension_semantics<parallel>, #tpu.dimension_semantics<parallel>, #tpu.dimension_semantics<arbitrary>], iteration_bounds = array<i64: 2, 1, 2>, scalar_prefetch = 0 : i64, scratch_operands = 4 : i64, tpu.core_type = #tpu.core_type<tc>, window_params = [{transform_indices = @transform_0, window_bounds = array<i64: 1, 8, 128>}, {transform_indices = @transform_1, window_bounds = array<i64: 1, 1, 128>}, {transform_indices = @transform_2, window_bounds = array<i64: 1, 128, 1>}, {transform_indices = @transform_3, window_bounds = array<i64: 1, 1, 128>}, {transform_indices = @transform_4, window_bounds = array<i64: 1, 8, 128>}, {transform_indices = @transform_5, window_bounds = array<i64: 1, 8, 128>}]} {
    %c0_i32 = arith.constant 0 : i32
    %0 = arith.cmpi eq, %arg2, %c0_i32 : i32
    %1 = arith.extui %0 : i1 to i32
    %c0_i32_0 = arith.constant 0 : i32
    %2 = arith.cmpi ne, %1, %c0_i32_0 : i32
    scf.if %2 {
      %cst_40 = arith.constant 0.000000e+00 : f32
      %69 = vector.broadcast %cst_40 : f32 to vector<8x128xf32>
      %c0_41 = arith.constant 0 : index
      %c0_42 = arith.constant 0 : index
      %70 = vector.load %arg9[%c0_41, %c0_42] : memref<8x128xf32, #tpu.memory_space<vmem>>, vector<8x128xf32>
      tpu.vector_store %arg9[%c0_41, %c0_42], %69 {strides = array<i32>} : memref<8x128xf32, #tpu.memory_space<vmem>>, vector<8x128xf32>,
      %cst_43 = arith.constant 0.000000e+00 : f32
      %71 = vector.broadcast %cst_43 : f32 to vector<8x128xf32>
      %c0_44 = arith.constant 0 : index
      %c0_45 = arith.constant 0 : index
      %72 = vector.load %arg10[%c0_44, %c0_45] : memref<8x128xf32, #tpu.memory_space<vmem>>, vector<8x128xf32>
      tpu.vector_store %arg10[%c0_44, %c0_45], %71 {strides = array<i32>} : memref<8x128xf32, #tpu.memory_space<vmem>>, vector<8x128xf32>,
      %cst_46 = arith.constant 0.000000e+00 : f32
      %73 = vector.broadcast %cst_46 : f32 to vector<8x1xf32>
      %c0_47 = arith.constant 0 : index
      %c0_48 = arith.constant 0 : index
      %74 = vector.load %arg11[%c0_47, %c0_48] : memref<8x1xf32, #tpu.memory_space<vmem>>, vector<8x1xf32>
      tpu.vector_store %arg11[%c0_47, %c0_48], %73 {strides = array<i32>} : memref<8x1xf32, #tpu.memory_space<vmem>>, vector<8x1xf32>,
      %cst_49 = arith.constant 0.000000e+00 : f32
      %75 = vector.broadcast %cst_49 : f32 to vector<8x1xf32>
      %c0_50 = arith.constant 0 : index
      %c0_51 = arith.constant 0 : index
      %76 = vector.load %arg12[%c0_50, %c0_51] : memref<8x1xf32, #tpu.memory_space<vmem>>, vector<8x1xf32>
      tpu.vector_store %arg12[%c0_50, %c0_51], %75 {strides = array<i32>} : memref<8x1xf32, #tpu.memory_space<vmem>>, vector<8x1xf32>,
    } else {
    }
    %c0 = arith.constant 0 : index
    %c0_1 = arith.constant 0 : index
    %c0_2 = arith.constant 0 : index
    %3 = vector.load %arg3[%c0, %c0_1, %c0_2] : memref<1x8x128xf32, #tpu.memory_space<vmem>>, vector<1x8x128xf32>
    %4 = vector.shape_cast %3 : vector<1x8x128xf32> to vector<8x128xf32>
    %c0_3 = arith.constant 0 : index
    %c0_4 = arith.constant 0 : index
    %c0_5 = arith.constant 0 : index
    %5 = vector.load %arg4[%c0_3, %c0_4, %c0_5] : memref<1x1x128xi32, #tpu.memory_space<vmem>>, vector<1x1x128xi32>
    %6 = vector.shape_cast %5 : vector<1x1x128xi32> to vector<1x128xi32>
    %c0_6 = arith.constant 0 : index
    %c0_7 = arith.constant 0 : index
    %c0_8 = arith.constant 0 : index
    %7 = vector.load %arg5[%c0_6, %c0_7, %c0_8] : memref<1x128x1xi32, #tpu.memory_space<vmem>>, vector<1x128x1xi32>
    %8 = vector.shape_cast %7 : vector<1x128x1xi32> to vector<128x1xi32>
    %9 = vector.broadcast %6 : vector<1x128xi32> to vector<128x128xi32>
    %10 = vector.broadcast %8 : vector<128x1xi32> to vector<128x128xi32>
    %11 = arith.cmpi eq, %9, %10 : vector<128x128xi32>
    %cst = arith.constant 1.000000e+00 : f32
    %cst_9 = arith.constant 0.000000e+00 : f32
    %12 = vector.broadcast %cst : f32 to vector<128x128xf32>
    %13 = vector.broadcast %cst_9 : f32 to vector<128x128xf32>
    %14 = arith.select %11, %12, %13 : vector<128x128xi1>, vector<128x128xf32>
    %15 = arith.truncf %14 : vector<128x128xf32> to vector<128x128xbf16>
    %16 = math.absf %4 : vector<8x128xf32>
    %cst_10 = arith.constant 0.000000e+00 : f32
    %17 = vector.broadcast %cst_10 : f32 to vector<8x128xf32>
    %18 = arith.subf %17, %16 : vector<8x128xf32>
    %19 = math.exp %18 : vector<8x128xf32>
    %20 = math.log1p %19 : vector<8x128xf32>
    %cst_11 = arith.constant 0.000000e+00 : f32
    %21 = vector.broadcast %cst_11 : f32 to vector<8x128xf32>
    %22 = arith.subf %21, %4 : vector<8x128xf32>
    %cst_12 = arith.constant 0.000000e+00 : f32
    %23 = vector.broadcast %cst_12 : f32 to vector<8x128xf32>
    %24 = arith.maximumf %22, %23 : vector<8x128xf32>
    %25 = arith.addf %24, %20 : vector<8x128xf32>
    %26 = arith.addf %25, %4 : vector<8x128xf32>
    %cst_13 = arith.constant 0.000000e+00 : f32
    %27 = vector.broadcast %cst_13 : f32 to vector<8x128xf32>
    %28 = arith.cmpf oge, %4, %27 : vector<8x128xf32>
    %cst_14 = arith.constant 1.000000e+00 : f32
    %29 = vector.broadcast %cst_14 : f32 to vector<8x128xf32>
    %30 = arith.select %28, %29, %19 : vector<8x128xi1>, vector<8x128xf32>
    %cst_15 = arith.constant 1.000000e+00 : f32
    %31 = vector.broadcast %cst_15 : f32 to vector<8x128xf32>
    %32 = arith.addf %31, %19 : vector<8x128xf32>
    %33 = tpu.reciprocal %32 {approx = true} : vector<8x128xf32> -> vector<8x128xf32>
    %34 = arith.mulf %30, %33 : vector<8x128xf32>
    %cst_16 = arith.constant 1.000000e+00 : f32
    %35 = vector.broadcast %cst_16 : f32 to vector<8x128xf32>
    %36 = arith.subf %35, %34 : vector<8x128xf32>
    %37 = arith.mulf %36, %36 : vector<8x128xf32>
    %cst_17 = arith.constant 2.500000e-01 : f32
    %38 = vector.broadcast %cst_17 : f32 to vector<8x128xf32>
    %39 = arith.mulf %38, %37 : vector<8x128xf32>
    %40 = arith.mulf %39, %25 : vector<8x128xf32>
    %41 = arith.mulf %34, %34 : vector<8x128xf32>
    %cst_18 = arith.constant 7.500000e-01 : f32
    %42 = vector.broadcast %cst_18 : f32 to vector<8x128xf32>
    %43 = arith.mulf %42, %41 : vector<8x128xf32>
    %44 = arith.mulf %43, %26 : vector<8x128xf32>
    %c0_19 = arith.constant 0 : index
    %c0_20 = arith.constant 0 : index
    %45 = vector.load %arg9[%c0_19, %c0_20] : memref<8x128xf32, #tpu.memory_space<vmem>>, vector<8x128xf32>
    %46 = arith.subf %40, %44 : vector<8x128xf32>
    %47 = arith.truncf %46 : vector<8x128xf32> to vector<8x128xbf16>
    %cst_21 = arith.constant dense<0.000000e+00> : vector<8x128xf32>
    %48 = tpu.matmul %47, %15, %cst_21 {dimension_numbers = #tpu.dot_dimension_numbers<[1], [1], [0], [0], [0, 0, 1, 0], [], []>} : vector<8x128xbf16>, vector<128x128xbf16>, vector<8x128xf32> -> vector<8x128xf32>
    %49 = arith.addf %45, %48 : vector<8x128xf32>
    %c0_22 = arith.constant 0 : index
    %c0_23 = arith.constant 0 : index
    %50 = vector.load %arg9[%c0_22, %c0_23] : memref<8x128xf32, #tpu.memory_space<vmem>>, vector<8x128xf32>
    tpu.vector_store %arg9[%c0_22, %c0_23], %49 {strides = array<i32>} : memref<8x128xf32, #tpu.memory_space<vmem>>, vector<8x128xf32>,
    %c0_24 = arith.constant 0 : index
    %c0_25 = arith.constant 0 : index
    %51 = vector.load %arg10[%c0_24, %c0_25] : memref<8x128xf32, #tpu.memory_space<vmem>>, vector<8x128xf32>
    %52 = arith.truncf %34 : vector<8x128xf32> to vector<8x128xbf16>
    %cst_26 = arith.constant dense<0.000000e+00> : vector<8x128xf32>
    %53 = tpu.matmul %52, %15, %cst_26 {dimension_numbers = #tpu.dot_dimension_numbers<[1], [1], [0], [0], [0, 0, 1, 0], [], []>} : vector<8x128xbf16>, vector<128x128xbf16>, vector<8x128xf32> -> vector<8x128xf32>
    %54 = arith.addf %51, %53 : vector<8x128xf32>
    %c0_27 = arith.constant 0 : index
    %c0_28 = arith.constant 0 : index
    %55 = vector.load %arg10[%c0_27, %c0_28] : memref<8x128xf32, #tpu.memory_space<vmem>>, vector<8x128xf32>
    tpu.vector_store %arg10[%c0_27, %c0_28], %54 {strides = array<i32>} : memref<8x128xf32, #tpu.memory_space<vmem>>, vector<8x128xf32>,
    %c0_29 = arith.constant 0 : index
    %c0_30 = arith.constant 0 : index
    %56 = vector.load %arg11[%c0_29, %c0_30] : memref<8x1xf32, #tpu.memory_space<vmem>>, vector<8x1xf32>
    %cst_31 = arith.constant dense<0.000000e+00> : vector<8xf32>
    %57 = vector.multi_reduction <add>, %44, %cst_31 [1] : vector<8x128xf32> to vector<8xf32>
    %58 = vector.shape_cast %57 : vector<8xf32> to vector<8x1xf32>
    %59 = arith.addf %56, %58 : vector<8x1xf32>
    %c0_32 = arith.constant 0 : index
    %c0_33 = arith.constant 0 : index
    %60 = vector.load %arg11[%c0_32, %c0_33] : memref<8x1xf32, #tpu.memory_space<vmem>>, vector<8x1xf32>
    tpu.vector_store %arg11[%c0_32, %c0_33], %59 {strides = array<i32>} : memref<8x1xf32, #tpu.memory_space<vmem>>, vector<8x1xf32>,
    %c0_34 = arith.constant 0 : index
    %c0_35 = arith.constant 0 : index
    %61 = vector.load %arg12[%c0_34, %c0_35] : memref<8x1xf32, #tpu.memory_space<vmem>>, vector<8x1xf32>
    %cst_36 = arith.constant dense<0.000000e+00> : vector<8xf32>
    %62 = vector.multi_reduction <add>, %34, %cst_36 [1] : vector<8x128xf32> to vector<8xf32>
    %63 = vector.shape_cast %62 : vector<8xf32> to vector<8x1xf32>
    %64 = arith.addf %61, %63 : vector<8x1xf32>
    %c0_37 = arith.constant 0 : index
    %c0_38 = arith.constant 0 : index
    %65 = vector.load %arg12[%c0_37, %c0_38] : memref<8x1xf32, #tpu.memory_space<vmem>>, vector<8x1xf32>
    tpu.vector_store %arg12[%c0_37, %c0_38], %64 {strides = array<i32>} : memref<8x1xf32, #tpu.memory_space<vmem>>, vector<8x1xf32>,
    %c1_i32 = arith.constant 1 : i32
    %66 = arith.cmpi eq, %arg2, %c1_i32 : i32
    %67 = arith.extui %66 : i1 to i32
    %c0_i32_39 = arith.constant 0 : i32
    %68 = arith.cmpi ne, %67, %c0_i32_39 : i32
    scf.if %68 {
      %c0_40 = arith.constant 0 : index
      %c0_41 = arith.constant 0 : index
      %69 = vector.load %arg11[%c0_40, %c0_41] : memref<8x1xf32, #tpu.memory_space<vmem>>, vector<8x1xf32>
      %c0_42 = arith.constant 0 : index
      %c0_43 = arith.constant 0 : index
      %70 = vector.load %arg9[%c0_42, %c0_43] : memref<8x128xf32, #tpu.memory_space<vmem>>, vector<8x128xf32>
      %71 = vector.broadcast %69 : vector<8x1xf32> to vector<8x128xf32>
      %72 = arith.addf %71, %70 : vector<8x128xf32>
      %cst_44 = arith.constant 3.906250e-03 : f32
      %73 = vector.broadcast %cst_44 : f32 to vector<8x128xf32>
      %74 = arith.mulf %72, %73 : vector<8x128xf32>
      %c0_45 = arith.constant 0 : index
      %c0_46 = arith.constant 0 : index
      %c0_47 = arith.constant 0 : index
      %75 = vector.load %arg7[%c0_45, %c0_46, %c0_47] : memref<1x8x128xf32, #tpu.memory_space<vmem>>, vector<1x8x128xf32>
      %76 = vector.shape_cast %75 : vector<1x8x128xf32> to vector<8x128xf32>
      %77 = vector.shape_cast %74 : vector<8x128xf32> to vector<1x8x128xf32>
      tpu.vector_store %arg7[%c0_45, %c0_46, %c0_47], %77 {strides = array<i32>} : memref<1x8x128xf32, #tpu.memory_space<vmem>>, vector<1x8x128xf32>,
      %c0_48 = arith.constant 0 : index
      %c0_49 = arith.constant 0 : index
      %78 = vector.load %arg12[%c0_48, %c0_49] : memref<8x1xf32, #tpu.memory_space<vmem>>, vector<8x1xf32>
      %c0_50 = arith.constant 0 : index
      %c0_51 = arith.constant 0 : index
      %c0_52 = arith.constant 0 : index
      %79 = vector.load %arg6[%c0_50, %c0_51, %c0_52] : memref<1x1x128xf32, #tpu.memory_space<vmem>>, vector<1x1x128xf32>
      %80 = vector.shape_cast %79 : vector<1x1x128xf32> to vector<1x128xf32>
      %81 = vector.broadcast %78 : vector<8x1xf32> to vector<8x128xf32>
      %82 = vector.broadcast %80 : vector<1x128xf32> to vector<8x128xf32>
      %83 = arith.addf %81, %82 : vector<8x128xf32>
      %c0_53 = arith.constant 0 : index
      %c0_54 = arith.constant 0 : index
      %84 = vector.load %arg10[%c0_53, %c0_54] : memref<8x128xf32, #tpu.memory_space<vmem>>, vector<8x128xf32>
      %cst_55 = arith.constant 2.000000e+00 : f32
      %85 = vector.broadcast %cst_55 : f32 to vector<8x128xf32>
      %86 = arith.mulf %85, %84 : vector<8x128xf32>
      %cst_56 = arith.constant 1.000000e+00 : f32
      %87 = vector.broadcast %cst_56 : f32 to vector<8x128xf32>
      %88 = arith.addf %86, %87 : vector<8x128xf32>
      %cst_57 = arith.constant 1.000000e+00 : f32
      %89 = vector.broadcast %cst_57 : f32 to vector<8x128xf32>
      %90 = arith.addf %83, %89 : vector<8x128xf32>
      %91 = arith.divf %88, %90 : vector<8x128xf32>
      %cst_58 = arith.constant 1.000000e+00 : f32
      %92 = vector.broadcast %cst_58 : f32 to vector<8x128xf32>
      %93 = arith.subf %92, %91 : vector<8x128xf32>
      %c0_59 = arith.constant 0 : index
      %c0_60 = arith.constant 0 : index
      %c0_61 = arith.constant 0 : index
      %94 = vector.load %arg8[%c0_59, %c0_60, %c0_61] : memref<1x8x128xf32, #tpu.memory_space<vmem>>, vector<1x8x128xf32>
      %95 = vector.shape_cast %94 : vector<1x8x128xf32> to vector<8x128xf32>
      %96 = vector.shape_cast %93 : vector<8x128xf32> to vector<1x8x128xf32>
      tpu.vector_store %arg8[%c0_59, %c0_60, %c0_61], %96 {strides = array<i32>} : memref<1x8x128xf32, #tpu.memory_space<vmem>>, vector<1x8x128xf32>,
    } else {
    }
    return
  }
  func.func @transform_0(%arg0: i32, %arg1: i32, %arg2: i32) -> (i32, i32, i32) {
    %c0_i32 = arith.constant 0 : i32
    return %arg0, %arg1, %arg2 : i32, i32, i32
  }
  func.func @transform_1(%arg0: i32, %arg1: i32, %arg2: i32) -> (i32, i32, i32) {
    %c0_i32 = arith.constant 0 : i32
    %c0_i32_0 = arith.constant 0 : i32
    return %arg0, %c0_i32, %arg2 : i32, i32, i32
  }
  func.func @transform_2(%arg0: i32, %arg1: i32, %arg2: i32) -> (i32, i32, i32) {
    %c0_i32 = arith.constant 0 : i32
    %c0_i32_0 = arith.constant 0 : i32
    %c0_i32_1 = arith.constant 0 : i32
    return %arg0, %c0_i32, %c0_i32_0 : i32, i32, i32
  }
  func.func @transform_3(%arg0: i32, %arg1: i32, %arg2: i32) -> (i32, i32, i32) {
    %c0_i32 = arith.constant 0 : i32
    %c0_i32_0 = arith.constant 0 : i32
    %c0_i32_1 = arith.constant 0 : i32
    return %arg0, %c0_i32, %c0_i32_0 : i32, i32, i32
  }
  func.func @transform_4(%arg0: i32, %arg1: i32, %arg2: i32) -> (i32, i32, i32) {
    %c0_i32 = arith.constant 0 : i32
    %c0_i32_0 = arith.constant 0 : i32
    return %arg0, %arg1, %c0_i32 : i32, i32, i32
  }
  func.func @transform_5(%arg0: i32, %arg1: i32, %arg2: i32) -> (i32, i32, i32) {
    %c0_i32 = arith.constant 0 : i32
    %c0_i32_0 = arith.constant 0 : i32
    return %arg0, %arg1, %c0_i32 : i32, i32, i32
  }
}

</mosaic_0001>

<bundles_post_ra>
// kernel: tpu_custom_call.1
= control target key start
LH: loop header
LB: loop body
LE: loop exit
PB: predicated region body
PF: predicated region fallthrough
CT: control target
= control target key end

     0   :  { %11 = vsyncpa [#allocation7], 0  ;;  %s1454_s0 = inlined_call_operand.vmem [shape: f32[2,8,256], index: 0, kind: input, shape index: {}]   ;;  %s1455_s1 = inlined_call_operand.vmem [shape: s32[2,1,256], index: 1, kind: input, shape index: {}]   ;;  %s1456_s2 = inlined_call_operand.vmem [shape: s32[2,128,1], index: 2, kind: input, shape index: {}]   ;;  %s1457_s3 = inlined_call_operand.vmem [shape: f32[2,1,128], index: 3, kind: input, shape index: {}]   ;;  %s1458_s4 = inlined_call_operand.hbm [shape: f32[2,8,128], index: 4, kind: output, shape index: {0}]   ;;  %s1459_s5 = inlined_call_operand.hbm [shape: f32[2,8,128], index: 5, kind: output, shape index: {1}]  }
   0x1   :  { %13 = vsyncpa [#allocation7 + $0x1], 0 }
   0x2   :  { %14 = vsyncpa [#allocation9], 0 }
   0x3   :  { %16 = vsyncpa [#allocation9 + $0x1], 0  ;;  %s1186_s18 = smov 0   ;;  %s1188_s19 = smov 0  }
   0x4   :  { %s1190_s20 = smov 0   ;;  %s1192_s21 = smov 0  }
   0x5   :  { %s1194_s22 = smov 0   ;;  %s1196_s23 = smov 0  }
   0x6   :  { %s1198_s24 = smov 0   ;;  %s1200_s25 = smov 0  }
   0x7 LB: > { %1465 = sst [smem:[#allocation12_spill]] %s1122_s19  ;;  %s818_s26 = sadd.s32 4294967295, %s1146_s25   ;;  %s1146_s25 = sphi %s1200_s25, %s22_s25   ;;  %s1142_s24 = sphi %s1198_s24, %s1480_s24   ;;  %s1138_s23 = sphi %s1196_s23, %s1479_s23   ;;  %s1134_s22 = sphi %s1194_s22, %s1478_s22   ;;  %s1130_s21 = sphi %s1192_s21, %s1477_s21   ;;  %s1126_s20 = sphi %s1190_s20, %s1476_s20   ;;  %s1122_s19 = sphi %s1188_s19, %s1475_s19   ;;  %s1118_s18 = sphi %s1186_s18, %s1474_s18  }
   0x8   : > { %1466 = sst [smem:[#allocation13_spill]] %s1126_s20  ;;  %s819_s27 = sadd.s32 4294967294, %s1146_s25  }
   0x9   : > { %1467 = sst [smem:[#allocation14_spill]] %s1138_s23  ;;  %s34_s28 = sadd.s32 1, %s1138_s23 }
   0xa   : > { %1468 = sst [smem:[#allocation15_spill]] %s1142_s24  ;;  %p35_p0 = scmp.ge.s32.totalorder %s34_s28, 2 }
   0xb   : > { %s41_s29 = sadd.s32 1, %s1142_s24  ;;  %p170_p1 = scmp.ne.s32.totalorder %s1126_s20, %s1122_s19 }
   0xc   : > { %p171_p2 = scmp.eq.s32.totalorder %s818_s26, 3  ;;  %s1482_s28 = smov (%p35_p0, %s34_s28), 0 }
   0xd   : > { %1469 = sst [smem:[#allocation16_spill]] %s1482_s28  ;;  %s1484_s29 = smov (!%p35_p0, %s41_s29), %s1142_s24 }
   0xe   : > { %p1235_p3 = por %p171_p2, %p170_p1  ;;  %p176_p4 = scmp.ne.s32.totalorder %s1122_s19, %s1118_s18 }
   0xf   : > { %p43_p5 = scmp.ge.s32.totalorder %s1484_s29, 2  ;;  %p177_p6 = scmp.eq.s32.totalorder %s819_s27, 3 }
  0x10   : > { %p822_p7 = scmp.ge.s32.totalorder %s1146_s25, 1  ;;  %p262_p8 = scmp.lt.s32.totalorder %s1146_s25, 5 }
  0x11   : > { %s1486_s29 = smov (%p43_p5, %s1484_s29), 0  ;;  %p1245_p9 = por %p177_p6, %p176_p4 }
  0x12   : > { %1471 = sst [smem:[#allocation17_spill]] %s1486_s29  ;;  %p263_p10 = pnand %p822_p7, %p262_p8 }
  0x13   : > { %s155_s7 = ssub.s32 %s1142_s24, %s1486_s29  ;;  %s160_s8 = sadd.s32 1, %s1126_s20 }
  0x14   : > { %p158_p11 = scmp.eq.s32.totalorder %s155_s7, 0  ;;  %266 = sbr.rel (%p263_p10) target bundleno = 630 (0x276), region = 36 }
  0x15   : > { %s1256_s10 = sand.u32 (!%p263_p10), 1, %s1122_s19   ;;  %p317_p12 = scmp.lt.s32.totalorder (!%p263_p10), %s1134_s22, 1 }
  0x16   : > { %s1253_s9 = scalar_select %p158_p11, %s1126_s20, %s160_s8  }
  0x17   : > { %s823_s11 = sshll.u32 (!%p263_p10), %s1256_s10, 3  ;;  %p321_p13 = scmp.lt.s32.totalorder (!%p263_p10), %s1130_s21, 1 }
  0x18   : > { %1473 = sst [smem:[#allocation18_spill]] %s1253_s9  ;;  %s1288_s19 = scalar_lea.vmem (!%p263_p10), [#allocation6], %s823_s11 }
  0x19   : > { %s1262_s12 = scalar_select %p317_p12, %s1134_s22, 1 }
  0x1a   : > { %s322_s13 = scalar_select %p321_p13, %s1130_s21, 1 }
  0x1b   : > { %s825_s14 = sshll.u32 %s1262_s12, 1  ;;  %s872_s15 = sshll.u32 %s1262_s12, 7 }
  0x1c   : > { %s1267_s16 = sadd.s32 %s825_s14, %s322_s13  ;;  %s1272_s27 = scalar_lea.vmem %s1456_s2, %s872_s15 }
  0x1d   : > { %s826_s7 = sshll.u32 %s1267_s16, 3  ;;  %s335_s28 = scalar_lea.vmem %s1455_s1, %s1267_s16 }
  0x1e   : > { %s1282_s9 = scalar_lea.vmem %s1454_s0, %s826_s7  ;;  %s343_s14 = scalar_lea.vmem %s1457_s3, %s1262_s12 }
  0x1f   : > { %s1290_s17 = scalar_lea.vmem [#allocation8], %s823_s11  ;;  %p830_p0 = scmp.ne.s32.totalorder %s1130_s21, 0 }
  0x21   : > { %348 = sbr.rel (%p830_p0) target bundleno = 41 (0x29), region = 40 }
  0x26   : > { %vm351_vm0 = vcmask 7168   ;;  %v1148_v0 = vmov 0.0  }
  0x27   : > { %349 = vst [vmem:[#allocation2] sm:$0xff] %v1148_v0  ;;  %350 = vst [vmem:[#allocation3] sm:$0xff] %v1148_v0 }
  0x28   : > { %352 = vst.msk [vmem:[#allocation4] sm:$0xff] %vm351_vm0, %v1148_v0  ;;  %353 = vst.msk [vmem:[#allocation5] sm:$0xff] %vm351_vm0, %v1148_v0 }
  0x29 PF: > { %v370_v1 = vld [vmem:[%s1272_s27 + $0x70] sm:$0xff]  ;;  %v368_v2 = vld [vmem:[%s1272_s27 + $0x60] sm:$0xff]  ;;  %v1149_v3 = vmov 0   ;;  %v371_v4 = vld [vmem:[%s1272_s27 + $0x78] sm:$0xff]  ;;  %v1150_v6 = vmov 0.0   ;;  %vm1151_vm3 = vmmov 0  }
  0x2a   : > { %1014 = vset.pattern.permute.xlu1 %v1149_v3  ;;  %1013 = vset.pattern.permute.xlu0 %v1149_v3  ;;  %v369_v5 = vld [vmem:[%s1272_s27 + $0x68] sm:$0xff]  ;;  %v367_v7 = vld [vmem:[%s1272_s27 + $0x58] sm:$0xff]  ;;  %v366_v8 = vld [vmem:[%s1272_s27 + $0x50] sm:$0xff]  ;;  %v1152_v51 = vmov 1.0|1.0   ;;  %p864_p1 = scmp.ne.s32.totalorder %s1130_s21, 1 }
  0x2b   : > { %419 = vperm.xlu0 %1013, %v370_v1   ;;  %413 = vperm.xlu1 %1014, %v368_v2   ;;  %v365_v9 = vld [vmem:[%s1272_s27 + $0x48] sm:$0xff]  ;;  %v364_v10 = vld [vmem:[%s1272_s27 + $0x40] sm:$0xff]  ;;  %v363_v11 = vld [vmem:[%s1272_s27 + $0x38] sm:$0xff] }
  0x2c   : > { %891 = vmatprep.subr.bf16.mxu0 %v1150_v6  ;;  %911 = vmatprep.subr.bf16.mxu1 %v1150_v6  ;;  %v362_v12 = vld [vmem:[%s1272_s27 + $0x30] sm:$0xff]  ;;  %v354_v13 = vld [vmem:[%s1282_s9] sm:$0xff]  ;;  %v361_v15 = vld [vmem:[%s1272_s27 + $0x28] sm:$0xff] }
  0x2d   : > { %v464_v14 = vand.u32 2147483647, %v354_v13  ;;  %v360_v16 = vld [vmem:[%s1272_s27 + $0x20] sm:$0xff]  ;;  %v359_v19 = vld [vmem:[%s1272_s27 + $0x18] sm:$0xff]  ;;  %v358_v20 = vld [vmem:[%s1272_s27 + $0x10] sm:$0xff]  ;;  %vm481_vm1 = vcmp.ge.f32.partialorder %v354_v13, 0.0  ;;  %907 = vmatprep.mubr.msk.bf16.mxu0 %vm1151_vm3, %v1150_v6  ;;  %927 = vmatprep.mubr.msk.bf16.mxu1 %vm1151_vm3, %v1150_v6 }
  0x2e   : > { %v357_v21 = vld [vmem:[%s1272_s27 + $0x8] sm:$0xff]  ;;  %v356_v22 = vld [vmem:[%s1272_s27] sm:$0xff]  ;;  %v477_v31 = vsub.f32 0.0, %v354_v13 }
  0x2f   : > { %422 = vperm.xlu0 %1013, %v371_v4   ;;  %416 = vperm.xlu1 %1014, %v369_v5   ;;  %v465_v17 = vsub.f32 0.0, %v464_v14  ;;  %v1327_v48 = vld [vmem:[%s335_s28] ss:$0 sm:$0xff]  ;;  %v588_v3 = vld [vmem:[#allocation5] sm:$0xff]  ;;  %v582_v5 = vld [vmem:[#allocation4] sm:$0xff] }
  0x30   : > { %v478_v35 = vmax.f32 %v477_v31, 0.0 }
  0x31   : > { %v466_v18 = vmul.f32 1.442695, %v465_v17 }
  0x33   : > { %410 = vperm.xlu1 %1014, %v367_v7   ;;  %407 = vperm.xlu0 %1013, %v366_v8   ;;  %1015 = vpow2.f32 %v466_v18 }
  0x37   : > { %404 = vperm.xlu1 %1014, %v365_v9   ;;  %401 = vperm.xlu0 %1013, %v364_v10   ;;  %v493_v9 = vld [vmem:[#allocation2] sm:$0xff]  ;;  %v538_v10 = vld [vmem:[#allocation3] sm:$0xff] }
  0x3b   : > { %398 = vperm.xlu1 %1014, %v363_v11   ;;  %395 = vperm.xlu0 %1013, %v362_v12  }
  0x3f   : > { %392 = vperm.xlu1 %1014, %v361_v15   ;;  %389 = vperm.xlu0 %1013, %v360_v16  }
  0x40   : > { %v1016_v23 = vpop.eup %1015 }
  0x41   : > { %v468_v24 = vadd.f32 1.0, %v1016_v23  ;;  %v471_v25 = vmul.f32 -0.5, %v1016_v23  ;;  %v482_v28 = vsel %vm481_vm1, 1.0, %v1016_v23  ;;  %v474_v30 = vand.u32 2147483647, %v1016_v23 }
  0x43   : > { %386 = vperm.xlu1 %1014, %v359_v19   ;;  %383 = vperm.xlu0 %1013, %v358_v20   ;;  %1017 = vrcp.f32 %v468_v24  ;;  %v472_v27 = vadd.f32 1.0, %v471_v25  ;;  %vm475_vm2 = vcmp.lt.f32.partialorder %v474_v30, 0.0004427343 }
  0x44   : > { %1019 = vlog2.f32 %v468_v24 }
  0x45   : > { %v473_v34 = vmul.f32 %v1016_v23, %v472_v27 }
  0x47   : > { %380 = vperm.xlu1 %1014, %v357_v21   ;;  %377 = vperm.xlu0 %1013, %v356_v22  }
  0x50   : > { %v1018_v26 = vpop.eup %1017 }
  0x51   : > { %v1020_v29 = vpop.eup %1019  ;;  %v1312_v32 = vmul.f32 %v1018_v26, %v482_v28 }
  0x52   : > { %v470_v33 = vmul.f32 0.6931472, %v1020_v29 }
  0x53   : > { %v486_v36 = vsub.f32 1.0, %v1312_v32  ;;  %v490_v40 = vmul.f32 %v1312_v32, %v1312_v32  ;;  %v539_v2 = vpack.c.bf16 %v1312_v32, %v1312_v32 }
  0x54   : > { %v476_v37 = vsel %vm475_vm2, %v473_v34, %v470_v33 }
  0x55   : > { %v479_v38 = vadd.f32 %v478_v35, %v476_v37  ;;  %v487_v39 = vmul.f32 %v486_v36, %v486_v36  ;;  %v491_v43 = vmul.f32 0.75, %v490_v40 }
  0x57   : > { %v480_v41 = vadd.f32 %v479_v38, %v354_v13  ;;  %v488_v42 = vmul.f32 0.25, %v487_v39 }
  0x59   : > { %v489_v44 = vmul.f32 %v488_v42, %v479_v38  ;;  %v492_v45 = vmul.f32 %v491_v43, %v480_v41 }
  0x5b   : > { %v1319_v46 = vsub.f32 %v489_v44, %v492_v45 }
  0x5d   : > { %v495_v1 = vpack.c.bf16 %v1319_v46, %v1319_v46 }
  0x66   : > { %583 = vadd.xlane.f32.xlu0 %v492_v45 }
  0x6b   : > { %589 = vadd.xlane.f32.xlu1 %v1312_v32 }
  0xa6   : > { %v420_v47 = vpop.permute.xlu0 %419  ;;  %v414_v49 = vpop.permute.xlu1 %413 }
  0xa7   : > { %vm438_vm4 = vcmp.eq.s32.totalorder %v1327_v48, %v420_v47  ;;  %vm436_vm7 = vcmp.eq.s32.totalorder %v1327_v48, %v414_v49 }
  0xaa   : > { %v423_v50 = vpop.permute.xlu0 %422  ;;  %v417_v52 = vpop.permute.xlu1 %416 }
  0xab   : > { %vm439_vm5 = vcmp.eq.s32.totalorder %v1327_v48, %v423_v50  ;;  %vm437_vm8 = vcmp.eq.s32.totalorder %v1327_v48, %v417_v52 }
  0xac   : > { %vm832_vm6 = vmpackc.low %vm439_vm5, %vm438_vm4 }
  0xad   : > { %892 = vmatpush3.bf16.xpose.msk.msra.mxu0 %vm832_vm6, %v1152_v51  ;;  %912 = vmatpush3.bf16.xpose.msk.msra.mxu1 %vm832_vm6, %v1152_v51  ;;  %vm834_vm9 = vmpackc.low %vm437_vm8, %vm436_vm7 }
  0xae   : > { %893 = vmatprep.subr.bf16.mxu0 %v1150_v6  ;;  %913 = vmatprep.subr.bf16.mxu1 %v1150_v6  ;;  %v411_v53 = vpop.permute.xlu1 %410  ;;  %v408_v54 = vpop.permute.xlu0 %407 }
  0xaf   : > { %vm435_vm10 = vcmp.eq.s32.totalorder %v1327_v48, %v411_v53  ;;  %vm434_vm11 = vcmp.eq.s32.totalorder %v1327_v48, %v408_v54 }
  0xb0   : > { %vm836_vm12 = vmpackc.low %vm435_vm10, %vm434_vm11 }
  0xb2   : > { %v405_v55 = vpop.permute.xlu1 %404  ;;  %v402_v56 = vpop.permute.xlu0 %401 }
  0xb3   : > { %vm433_vm13 = vcmp.eq.s32.totalorder %v1327_v48, %v405_v55  ;;  %vm432_vm14 = vcmp.eq.s32.totalorder %v1327_v48, %v402_v56 }
  0xb4   : > { %vm838_vm15 = vmpackc.low %vm433_vm13, %vm432_vm14 }
  0xb5   : > { %894 = vmatpush3.bf16.xpose.msk.msra.mxu0 %vm834_vm9, %v1152_v51  ;;  %914 = vmatpush3.bf16.xpose.msk.msra.mxu1 %vm834_vm9, %v1152_v51 }
  0xb6   : > { %895 = vmatprep.subr.bf16.mxu0 %v1150_v6  ;;  %915 = vmatprep.subr.bf16.mxu1 %v1150_v6  ;;  %v399_v57 = vpop.permute.xlu1 %398  ;;  %v396_v58 = vpop.permute.xlu0 %395 }
  0xb7   : > { %vm431_vm0 = vcmp.eq.s32.totalorder %v1327_v48, %v399_v57  ;;  %vm430_vm1 = vcmp.eq.s32.totalorder %v1327_v48, %v396_v58 }
  0xb8   : > { %vm840_vm2 = vmpackc.low %vm431_vm0, %vm430_vm1 }
  0xba   : > { %v393_v59 = vpop.permute.xlu1 %392  ;;  %v390_v60 = vpop.permute.xlu0 %389 }
  0xbb   : > { %vm429_vm3 = vcmp.eq.s32.totalorder %v1327_v48, %v393_v59  ;;  %vm428_vm4 = vcmp.eq.s32.totalorder %v1327_v48, %v390_v60 }
  0xbc   : > { %vm842_vm5 = vmpackc.low %vm429_vm3, %vm428_vm4 }
  0xbd   : > { %896 = vmatpush3.bf16.xpose.msk.msra.mxu0 %vm836_vm12, %v1152_v51  ;;  %916 = vmatpush3.bf16.xpose.msk.msra.mxu1 %vm836_vm12, %v1152_v51  ;;  %vm586_vm12 = vcmask 7168  }
  0xbe   : > { %897 = vmatprep.subr.bf16.mxu0 %v1150_v6  ;;  %917 = vmatprep.subr.bf16.mxu1 %v1150_v6  ;;  %v387_v61 = vpop.permute.xlu1 %386  ;;  %v384_v62 = vpop.permute.xlu0 %383 }
  0xbf   : > { %vm427_vm6 = vcmp.eq.s32.totalorder %v1327_v48, %v387_v61  ;;  %vm426_vm7 = vcmp.eq.s32.totalorder %v1327_v48, %v384_v62 }
  0xc0   : > { %vm844_vm8 = vmpackc.low %vm427_vm6, %vm426_vm7 }
  0xc2   : > { %v381_v63 = vpop.permute.xlu1 %380  ;;  %v378_v0 = vpop.permute.xlu0 %377 }
  0xc3   : > { %vm425_vm9 = vcmp.eq.s32.totalorder %v1327_v48, %v381_v63  ;;  %vm424_vm10 = vcmp.eq.s32.totalorder %v1327_v48, %v378_v0 }
  0xc4   : > { %vm846_vm11 = vmpackc.low %vm425_vm9, %vm424_vm10 }
  0xc5   : > { %898 = vmatpush3.bf16.xpose.msk.msra.mxu0 %vm838_vm15, %v1152_v51  ;;  %918 = vmatpush3.bf16.xpose.msk.msra.mxu1 %vm838_vm15, %v1152_v51 }
  0xc6   : > { %899 = vmatprep.subr.bf16.mxu0 %v1150_v6  ;;  %919 = vmatprep.subr.bf16.mxu1 %v1150_v6 }
  0xcd   : > { %900 = vmatpush3.bf16.xpose.msk.msra.mxu0 %vm840_vm2, %v1152_v51  ;;  %920 = vmatpush3.bf16.xpose.msk.msra.mxu1 %vm840_vm2, %v1152_v51 }
  0xce   : > { %901 = vmatprep.subr.bf16.mxu0 %v1150_v6  ;;  %921 = vmatprep.subr.bf16.mxu1 %v1150_v6 }
  0xd5   : > { %902 = vmatpush3.bf16.xpose.msk.msra.mxu0 %vm842_vm5, %v1152_v51  ;;  %922 = vmatpush3.bf16.xpose.msk.msra.mxu1 %vm842_vm5, %v1152_v51 }
  0xd6   : > { %903 = vmatprep.subr.bf16.mxu0 %v1150_v6  ;;  %923 = vmatprep.subr.bf16.mxu1 %v1150_v6 }
  0xdd   : > { %904 = vmatpush3.bf16.xpose.msk.msra.mxu0 %vm844_vm8, %v1152_v51  ;;  %924 = vmatpush3.bf16.xpose.msk.msra.mxu1 %vm844_vm8, %v1152_v51 }
  0xde   : > { %905 = vmatprep.subr.bf16.mxu0 %v1150_v6  ;;  %925 = vmatprep.subr.bf16.mxu1 %v1150_v6 }
  0xe5   : > { %906 = vmatpush3.bf16.xpose.msk.msra.mxu0 %vm846_vm11, %v1152_v51  ;;  %926 = vmatpush3.bf16.xpose.msk.msra.mxu1 %vm846_vm11, %v1152_v51 }
  0xec   : > { %908 = vmatmul.mubr.bf16.vlgmr.msra.gmra.mxu0 %v495_v1  ;;  %928 = vmatmul.mubr.bf16.vlgmr.msra.gmra.mxu1 %v539_v2 }
  0xef   : > { %v584_v6 = vpop.xlane.xlu0 %583 }
  0xf0   : > { %v585_v8 = vadd.f32 %v584_v6, %v582_v5 }
  0xf2   : > { %587 = vst.msk [vmem:[#allocation4] sm:$0xff] %vm586_vm12, %v585_v8 }
  0xf4   : > { %v590_v4 = vpop.xlane.xlu1 %589 }
  0xf5   : > { %v591_v7 = vadd.f32 %v590_v4, %v588_v3 }
  0xf7   : > { %592 = vst.msk [vmem:[#allocation5] sm:$0xff] %vm586_vm12, %v591_v7 }
 0x1ac   : > { %v530_v11 = vpop.f32.mrf.mxu0  ;;  %v574_v12 = vpop.f32.mrf.mxu1 }
 0x1ad   : > { %v536_v13 = vadd.f32 %v530_v11, %v493_v9  ;;  %v580_v14 = vadd.f32 %v574_v12, %v538_v10 }
 0x1ae   : > { %v909_v15 = vpop.f32.mrf.mxu0  ;;  %v929_v16 = vpop.f32.mrf.mxu1  ;;  %596 = sbr.rel (%p864_p1) target bundleno = 584 (0x248), region = 44 }
 0x1af   : > { %537 = vst [vmem:[#allocation2] sm:$0xff] %v536_v13  ;;  %581 = vst [vmem:[#allocation3] sm:$0xff] %v580_v14 }
 0x1b0   : > { %v533_v17 = vpop.f32.mrf.mxu0  ;;  %v577_v18 = vpop.f32.mrf.mxu1 }
 0x1b2   : > { %v910_v19 = vpop.f32.mrf.mxu0  ;;  %v930_v20 = vpop.f32.mrf.mxu1 }
 0x1b3   : > { %v607_v21 = vld [vmem:[#allocation5] sm:$0xff]  ;;  %v1153_v22 = vmov 0   ;;  %v597_v23 = vld [vmem:[#allocation4] sm:$0xff]  ;;  %v865_v24 = vld [vmem:[%s343_s14] ss:$0 sm:$0xff] }
 0x1b4   : > { %1021 = vset.pattern.permute.xlu0 %v1153_v22 }
 0x1b5   : > { %611 = vperm.xlu0 %1021, %v607_v21  }
 0x1b6   : > { %v598_v27 = vld [vmem:[#allocation2] sm:$0xff]  ;;  %v621_v32 = vld [vmem:[#allocation3] sm:$0xff] }
 0x1b7   : > { %v622_v33 = vmul.f32 2.0, %v621_v32 }
 0x1b9   : > { %601 = vperm.xlu0 %1021, %v597_v23   ;;  %v623_v34 = vadd.f32 1.0, %v622_v33 }
 0x230   : > { %v612_v25 = vpop.permute.xlu0 %611 }
 0x231   : > { %v620_v26 = vadd.f32 %v865_v24, %v612_v25 }
 0x233   : > { %v624_v28 = vadd.f32 1.0, %v620_v26 }
 0x234   : > { %v602_v29 = vpop.permute.xlu0 %601 }
 0x235   : > { %1022 = vrcp.f32 %v624_v28  ;;  %v604_v30 = vadd.f32 %v602_v29, %v598_v27 }
 0x237   : > { %v605_v31 = vmul.f32 0.00390625, %v604_v30 }
 0x239   : > { %606 = vst [vmem:[%s1288_s19] sm:$0xff] %v605_v31 }
 0x242   : > { %v1023_v35 = vpop.eup %1022 }
 0x243   : > { %v626_v36 = vmul.f32 %v1023_v35, %v623_v34 }
 0x245   : > { %v627_v37 = vsub.f32 1.0, %v626_v36 }
 0x247   : > { %628 = vst [vmem:[%s1290_s17] sm:$0xff] %v627_v37 }
 0x248 PF: > { %s868_s21 = sshll.u32 %s1134_s22, 7  ;;  %s649_s12 = sshll.u32 %s1288_s19, 4  ;;  %s650_s12 = int_to_ptr.vmem [resolvable:$true] %s649_s12 }
 0x249   : > { %s647_s11 = scalar_lea.hbm %s1458_s4, %s868_s21  ;;  %s630_s15 = scalar_lea.sflag [#allocation7], %s1256_s10 }
 0x24a   : > { %s1024_s16 = scalar_lea.vmem %s650_s12, 128  ;;  %s1154_s26 = smov [#allocation6]  }
 0x24b   : > { %p1025_p2 = scmp.ne.s32.totalorder %s650_s12, %s1024_s16  ;;  %s1028_s27 = sshll.u32 %s1154_s26, 4  ;;  %s1029_s27 = int_to_ptr.vmem [resolvable:$false] %s1028_s27 }
 0x24c   : > { %s1030_s7 = scalar_lea.vmem %s1029_s27, 256  ;;  %p1031_p6 = scmp.lt.s32.totalorder %s650_s12, %s1029_s27 }
 0x24d   : > { %p1026_p4 = pnand %p1025_p2, %p1235_p3  ;;  %p1032_p7 = scmp.lt.s32.totalorder %s1030_s7, %s1024_s16 }
 0x24f   : > { %p1027_p5 = pneg %p1026_p4  ;;  %p1033_p8 = por %p1032_p7, %p1031_p6 }
 0x251   : > { %p1034_p10 = pnand %p1033_p8, %p1027_p5 }
 0x253   : > { %1037 = shalt.err (!%p1034_p10)
}
 0x254   : > { %s1038_s8 = scalar_lea.hbm %s647_s11, 128  ;;  %s1042_s14 = scalar_lea.hbm %s1458_s4, 256 }
 0x255   : > { %p1039_p11 = scmp.ne.s32.totalorder %s647_s11, %s1038_s8  ;;  %p1043_p0 = scmp.lt.s32.totalorder %s647_s11, %s1458_s4 }
 0x256   : > { %p1044_p1 = scmp.lt.s32.totalorder %s1042_s14, %s1038_s8 }
 0x257   : > { %p1040_p12 = pnand %p1039_p11, %p1235_p3 }
 0x258   : > { %p1045_p2 = por %p1044_p1, %p1043_p0 }
 0x259   : > { %p1041_p13 = pneg %p1040_p12 }
 0x25b   : > { %p1046_p4 = pnand %p1045_p2, %p1041_p13 }
 0x25d   : > { %1049 = shalt.err (!%p1046_p4)
}
 0x25e   : > { %931 = dma.vmem_to_hbm [thread:$0]  (%p1235_p3), %s650_s12, 128, %s647_s11, %s630_s15  }
 0x25f   : > { %s661_s29 = scalar_lea.hbm %s1459_s5, %s868_s21  ;;  %s663_s9 = sshll.u32 %s1290_s17, 4  ;;  %s664_s9 = int_to_ptr.vmem [resolvable:$true] %s663_s9 }
 0x260   : > { %s635_s16 = scalar_lea.sflag [#allocation9], %s1256_s10  ;;  %s1050_s26 = scalar_lea.vmem %s664_s9, 128 }
 0x261   : > { %p1051_p5 = scmp.ne.s32.totalorder %s664_s9, %s1050_s26  ;;  %s1155_s27 = smov [#allocation8]  }
 0x262   : > { %s1054_s7 = sshll.u32 %s1155_s27, 4  ;;  %s1055_s7 = int_to_ptr.vmem [resolvable:$false] %s1054_s7 }
 0x263   : > { %p1052_p6 = pnand %p1051_p5, %p1235_p3  ;;  %s1056_s8 = scalar_lea.vmem %s1055_s7, 256 }
 0x264   : > { %p1057_p8 = scmp.lt.s32.totalorder %s664_s9, %s1055_s7  ;;  %p1058_p10 = scmp.lt.s32.totalorder %s1056_s8, %s1050_s26 }
 0x265   : > { %p1053_p7 = pneg %p1052_p6 }
 0x266   : > { %p1059_p11 = por %p1058_p10, %p1057_p8 }
 0x268   : > { %p1060_p12 = pnand %p1059_p11, %p1053_p7 }
 0x26a   : > { %1063 = shalt.err (!%p1060_p12)
}
 0x26b   : > { %s1064_s22 = scalar_lea.hbm %s661_s29, 128  ;;  %s1068_s21 = scalar_lea.hbm %s1459_s5, 256 }
 0x26c   : > { %p1065_p13 = scmp.ne.s32.totalorder %s661_s29, %s1064_s22  ;;  %p1069_p2 = scmp.lt.s32.totalorder %s661_s29, %s1459_s5 }
 0x26d   : > { %p1070_p4 = scmp.lt.s32.totalorder %s1068_s21, %s1064_s22 }
 0x26e   : > { %p1066_p0 = pnand %p1065_p13, %p1235_p3 }
 0x26f   : > { %p1071_p5 = por %p1070_p4, %p1069_p2 }
 0x270   : > { %p1067_p1 = pneg %p1066_p0 }
 0x272   : > { %p1072_p6 = pnand %p1071_p5, %p1067_p1 }
 0x274   : > { %1075 = shalt.err (!%p1072_p6)
}
 0x275   : > { %932 = dma.vmem_to_hbm [thread:$0]  (%p1235_p3), %s664_s9, 128, %s661_s29, %s635_s16  }
 0x276 PF: > { %p942_p7 = scmp.ge.s32.totalorder %s1146_s25, 2  ;;  %s675_s15 = sand.u32 1, %s1118_s18  }
 0x277   : > { %s676_s19 = scalar_lea.sflag [#allocation7], %s675_s15 }
 0x278   : > { %p936_p8 = pnand %p942_p7, %p1245_p9 }
 0x27a   : > { %p937_p10 = pneg %p936_p8 }
 0x27c   : > { %1109 = dma.done.wait (%p937_p10), %s676_s19, 128  }
 0x27d   : > { %1111 = vsyncadd (%p937_p10), %s676_s19, 4294967168  ;;  %s685_s13 = scalar_lea.sflag [#allocation9], %s675_s15 }
 0x27e   : > { %1113 = dma.done.wait (%p937_p10), %s685_s13, 128  }
 0x27f   : > { %1115 = vsyncadd (%p937_p10), %s685_s13, 4294967168  ;;  %s22_s25 = sadd.s32 1, %s1146_s25   ;;  %s1474_s18 = sld [smem:[#allocation12_spill]] }
 0x280   : > { %p19_p11 = scmp.ge.s32.totalorder %s22_s25, 6   ;;  %s1475_s19 = sld [smem:[#allocation13_spill]] }
 0x281   : > { %s1476_s20 = sld [smem:[#allocation18_spill]] }
 0x282   : > { %s1477_s21 = sld [smem:[#allocation14_spill]]  ;;  %21 = sbr.rel (!%p19_p11) target bundleno = 7 (0x7), region = 105 }
 0x283   : > { %s1478_s22 = sld [smem:[#allocation15_spill]] }
 0x284   : > { %s1479_s23 = sld [smem:[#allocation16_spill]] }
 0x285   : > { %s1480_s24 = sld [smem:[#allocation17_spill]] }
 0x287   :  { %690 = vsyncpa [#allocation7], 1 }
 0x288   :  { %692 = vsyncpa [#allocation7 + $0x1], 1 }
 0x289   :  { %693 = vsyncpa [#allocation9], 1 }
 0x28a   :  { %695 = vsyncpa [#allocation9 + $0x1], 1 }

</bundles_post_ra>
